<compile_context>
chip_gen: v7x
topology: tpu7x:2x2x1
jax: 0.10.0
libtpu: 0.0.40
codegen_flags: <defaults>
</compile_context>

<pallas_src>
import functools

import jax
import jax.numpy as jnp
from jax.experimental import pallas as pl
from jax.experimental.pallas import tpu as pltpu

_LANES = 128
_SUBLANES = 8
_MIN_TILE_ROWS = 16          # safe minimum for both f32 and bf16 operands
_MAX_TILE_ROWS = 2048        # keeps double-buffered blocks well under v5e's
                             # 16 MiB scoped-VMEM default (~3 MiB total here)


def _round_up(n, m):
    return ((n + m - 1) // m) * m


def _focal_bce_sum_kernel(x_ref, t_ref, o_ref, *,
                          k_steps, tile_rows, total, needs_mask):
    """Accumulates sum of BCE-with-logits over this core's rows into o_ref.

    o_ref is an (8, 128) f32 block that stays resident across the reduction
    (last) grid axis; each core p owns output block p.
    """
    p = pl.program_id(0)
    k = pl.program_id(1)

    @pl.when(k == 0)
    def _():
        o_ref[...] = jnp.zeros_like(o_ref)

    x = x_ref[...].astype(jnp.float32)
    t = t_ref[...].astype(jnp.float32)

    # Numerically-stable BCE-with-logits (matches torch.nn.BCEWithLogitsLoss):
    #   max(x, 0) - x*t + log1p(exp(-|x|))
    # TODO(synk): on v7x, if EUP ever saturates after the bandwidth fixes,
    # the two transcendentals could run in bf16 (keep f32 accumulation).
    bce = jnp.maximum(x, 0.0) - x * t + jnp.log1p(jnp.exp(-jnp.abs(x)))

    if needs_mask:
        # Zero out padded elements (pure VPU work, only emitted when padded).
        blk = p * k_steps + k
        row_g = blk * tile_rows + jax.lax.broadcasted_iota(jnp.int32, bce.shape, 0)
        lane = jax.lax.broadcasted_iota(jnp.int32, bce.shape, 1)
        full_rows = total // _LANES
        rem = total % _LANES
        valid = (row_g < full_rows) | ((row_g == full_rows) & (lane < rem))
        bce = jnp.where(valid, bce, 0.0)

    # Fold (TR, 128) -> (8, 128) with pure vreg adds (no cross-lane XLU work
    # in the hot loop), accumulate into the resident output block.
    o_ref[...] += bce.reshape(-1, _SUBLANES, _LANES).sum(axis=0)


def focal_loss(inputs, targets, alpha=0.25, gamma=2.0, tile_rows=1024):
    """Pallas focal loss. inputs: logits, targets: {0,1}, same shape."""
    assert inputs.shape == targets.shape
    total = int(inputs.size)

    rows = -(-total // _LANES)                       # cdiv
    # Two partial-sum streams (one per TensorCore on v7x); sequential and
    # essentially free on single-TC chips (v5e / v6e).
    num_cores = 2 if rows >= 2 * _MIN_TILE_ROWS else 1

    # Pick the largest VMEM-safe tile that is a multiple of the sublane
    # granularity and does not exceed this core's share of the rows.
    tr = max(_MIN_TILE_ROWS, min(int(tile_rows), _MAX_TILE_ROWS))
    tr = (tr // _MIN_TILE_ROWS) * _MIN_TILE_ROWS
    tr = min(tr, _round_up(-(-rows // num_cores), _MIN_TILE_ROWS))

    k_steps = -(-rows // (num_cores * tr))
    rows_pad = num_cores * tr * k_steps
    pad_elems = rows_pad * _LANES - total
    needs_mask = pad_elems > 0

    x_flat = inputs.reshape(-1)
    # {0,1} targets are exact in bf16; halves the target read traffic.
    t_flat = targets.reshape(-1).astype(jnp.bfloat16)
    if pad_elems:
        x_flat = jnp.pad(x_flat, (0, pad_elems))
        t_flat = jnp.pad(t_flat, (0, pad_elems))
    x2 = x_flat.reshape(rows_pad, _LANES)
    t2 = t_flat.reshape(rows_pad, _LANES)

    kernel = functools.partial(
        _focal_bce_sum_kernel,
        k_steps=k_steps, tile_rows=tr, total=total, needs_mask=needs_mask)

    partial = pl.pallas_call(
        kernel,
        out_shape=jax.ShapeDtypeStruct((num_cores * _SUBLANES, _LANES), jnp.float32),
        grid_spec=pltpu.PrefetchScalarGridSpec(
            num_scalar_prefetch=0,
            grid=(num_cores, k_steps),
            in_specs=[
                pl.BlockSpec((tr, _LANES), lambda p, k: (p * k_steps + k, 0)),
                pl.BlockSpec((tr, _LANES), lambda p, k: (p * k_steps + k, 0)),
            ],
            out_specs=pl.BlockSpec((_SUBLANES, _LANES), lambda p, k: (p, 0)),
        ),
        compiler_params=pltpu.CompilerParams(
            dimension_semantics=("parallel", "arbitrary")),
    )(x2, t2)

    # Tiny epilogue: combine partial sums and apply the focal transform.
    ce_loss = jnp.sum(partial) / jnp.float32(total)
    pt = jnp.exp(-ce_loss)
    one_m_pt = 1.0 - pt
    if float(gamma) == 2.0:
        weight = one_m_pt * one_m_pt          # avoid pow -> exp(log()) lowering
    else:
        weight = one_m_pt ** gamma
    return jnp.float32(alpha) * weight * ce_loss


if __name__ == "__main__":
    key = jax.random.PRNGKey(0)
    k1, k2 = jax.random.split(key)
    # small NCHW shapes consistent with a segmentation-style use of this loss
    x = jax.random.normal(k1, (2, 4, 16, 16), dtype=jnp.float32)   # logits
    t = (jax.random.uniform(k2, (2, 4, 16, 16)) > 0.5).astype(jnp.float32)

    loss = focal_loss(x, t, alpha=0.25, gamma=2.0)
    loss = jax.block_until_ready(loss)

    # pure-JAX reference (same math as the PyTorch module)
    bce_mean = jnp.mean(jnp.maximum(x, 0.0) - x * t + jnp.log1p(jnp.exp(-jnp.abs(x))))
    ref = 0.25 * (1.0 - jnp.exp(-bce_mean)) ** 2.0 * bce_mean
    assert jnp.allclose(loss, ref, rtol=1e-5, atol=1e-6), (loss, ref)

    print("KERNEL_OK")
</pallas_src>

<mosaic_0001>
module attributes {stable_mosaic.version = 11 : i64} {
  func.func @_focal_bce_sum_kernel(%arg0: i32, %arg1: i32, %arg2: memref<16x128xf32, #tpu.memory_space<vmem>>, %arg3: memref<16x128xbf16, #tpu.memory_space<vmem>>, %arg4: memref<8x128xf32, #tpu.memory_space<vmem>>) attributes {dimension_semantics = [#tpu.dimension_semantics<parallel>, #tpu.dimension_semantics<arbitrary>], iteration_bounds = array<i64: 1, 1>, scalar_prefetch = 0 : i64, scratch_operands = 0 : i64, tpu.core_type = #tpu.core_type<tc>, window_params = [{transform_indices = @transform_0, window_bounds = array<i64: 16, 128>}, {transform_indices = @transform_1, window_bounds = array<i64: 16, 128>}, {transform_indices = @transform_2, window_bounds = array<i64: 8, 128>}]} {
    %c0_i32 = arith.constant 0 : i32
    %0 = arith.cmpi eq, %arg1, %c0_i32 : i32
    %1 = arith.extui %0 : i1 to i32
    %c0_i32_0 = arith.constant 0 : i32
    %2 = arith.cmpi ne, %1, %c0_i32_0 : i32
    scf.if %2 {
      %cst_10 = arith.constant 0.000000e+00 : f32
      %21 = vector.broadcast %cst_10 : f32 to vector<8x128xf32>
      %c0_11 = arith.constant 0 : index
      %c0_12 = arith.constant 0 : index
      %22 = vector.load %arg4[%c0_11, %c0_12] : memref<8x128xf32, #tpu.memory_space<vmem>>, vector<8x128xf32>
      tpu.vector_store %arg4[%c0_11, %c0_12], %21 {strides = array<i32>} : memref<8x128xf32, #tpu.memory_space<vmem>>, vector<8x128xf32>,
    } else {
    }
    %c0 = arith.constant 0 : index
    %c0_1 = arith.constant 0 : index
    %3 = vector.load %arg2[%c0, %c0_1] : memref<16x128xf32, #tpu.memory_space<vmem>>, vector<16x128xf32>
    %c0_2 = arith.constant 0 : index
    %c0_3 = arith.constant 0 : index
    %4 = vector.load %arg3[%c0_2, %c0_3] : memref<16x128xbf16, #tpu.memory_space<vmem>>, vector<16x128xbf16>
    %5 = arith.extf %4 : vector<16x128xbf16> to vector<16x128xf32>
    %cst = arith.constant 0.000000e+00 : f32
    %6 = vector.broadcast %cst : f32 to vector<16x128xf32>
    %7 = arith.maximumf %3, %6 : vector<16x128xf32>
    %8 = arith.mulf %3, %5 : vector<16x128xf32>
    %9 = arith.subf %7, %8 : vector<16x128xf32>
    %10 = math.absf %3 : vector<16x128xf32>
    %cst_4 = arith.constant 0.000000e+00 : f32
    %11 = vector.broadcast %cst_4 : f32 to vector<16x128xf32>
    %12 = arith.subf %11, %10 : vector<16x128xf32>
    %13 = math.exp %12 : vector<16x128xf32>
    %14 = math.log1p %13 : vector<16x128xf32>
    %15 = arith.addf %9, %14 : vector<16x128xf32>
    %c0_5 = arith.constant 0 : index
    %c0_6 = arith.constant 0 : index
    %16 = vector.load %arg4[%c0_5, %c0_6] : memref<8x128xf32, #tpu.memory_space<vmem>>, vector<8x128xf32>
    %17 = vector.shape_cast %15 : vector<16x128xf32> to vector<2x8x128xf32>
    %cst_7 = arith.constant dense<0.000000e+00> : vector<8x128xf32>
    %18 = vector.multi_reduction <add>, %17, %cst_7 [0] : vector<2x8x128xf32> to vector<8x128xf32>
    %19 = arith.addf %16, %18 : vector<8x128xf32>
    %c0_8 = arith.constant 0 : index
    %c0_9 = arith.constant 0 : index
    %20 = vector.load %arg4[%c0_8, %c0_9] : memref<8x128xf32, #tpu.memory_space<vmem>>, vector<8x128xf32>
    tpu.vector_store %arg4[%c0_8, %c0_9], %19 {strides = array<i32>} : memref<8x128xf32, #tpu.memory_space<vmem>>, vector<8x128xf32>,
    return
  }
  func.func @transform_0(%arg0: i32, %arg1: i32) -> (i32, i32) {
    %c1_i32 = arith.constant 1 : i32
    %0 = arith.muli %arg0, %c1_i32 : i32
    %1 = arith.addi %0, %arg1 : i32
    %c0_i32 = arith.constant 0 : i32
    %c0_i32_0 = arith.constant 0 : i32
    return %1, %c0_i32 : i32, i32
  }
  func.func @transform_1(%arg0: i32, %arg1: i32) -> (i32, i32) {
    %c1_i32 = arith.constant 1 : i32
    %0 = arith.muli %arg0, %c1_i32 : i32
    %1 = arith.addi %0, %arg1 : i32
    %c0_i32 = arith.constant 0 : i32
    %c0_i32_0 = arith.constant 0 : i32
    return %1, %c0_i32 : i32, i32
  }
  func.func @transform_2(%arg0: i32, %arg1: i32) -> (i32, i32) {
    %c0_i32 = arith.constant 0 : i32
    %c0_i32_0 = arith.constant 0 : i32
    return %arg0, %c0_i32 : i32, i32
  }
}

</mosaic_0001>

<bundles_post_ra>
// kernel: tpu_custom_call.1
= control target key start
LH: loop header
LB: loop body
LE: loop exit
PB: predicated region body
PF: predicated region fallthrough
CT: control target
= control target key end

     0   :  { %7 = vsyncpa [#allocation3], 0  ;;  %s267_s0 = inlined_call_operand.hbm [shape: f32[16,128], index: 0, kind: input, shape index: {}]   ;;  %s268_s1 = inlined_call_operand.hbm [shape: bf16[16,128], index: 1, kind: input, shape index: {}]   ;;  %s269_s2 = inlined_call_operand.hbm [shape: f32[8,128], index: 2, kind: output, shape index: {}]  }
   0x1   :  { %8 = vsyncpa [#allocation6], 0 }
   0x2   :  { %9 = vsyncpa [#allocation4], 0  ;;  %s209_s9 = smov [#allocation2]   ;;  %s137_s13 = scalar_lea.hbm %s267_s0, 256 }
   0x3   :  { %s19_s10 = sshll.u32 %s209_s9, 4  ;;  %p138_p0 = scmp.ne.s32.totalorder %s267_s0, %s137_s13  ;;  %s20_s10 = int_to_ptr.vmem [resolvable:$true] %s19_s10 }
   0x4   :  { %p141_p1 = scmp.lt.u32.totalorder %s137_s13, %s267_s0 }
   0x6   :  { %p143_p2 = pnand %p141_p1, %p138_p0 }
   0x8   :  { %146 = shalt.err (!%p143_p2)
}
   0x9   :  { %s147_s18 = scalar_lea.vmem %s20_s10, 256  ;;  %p152_p4 = scmp.lt.s32.totalorder %s20_s10, %s20_s10 }
   0xa   :  { %p148_p3 = scmp.ne.s32.totalorder %s20_s10, %s147_s18  ;;  %p153_p5 = scmp.lt.s32.totalorder %s147_s18, %s147_s18 }
   0xc   :  { %p154_p6 = por %p153_p5, %p152_p4 }
   0xe   :  { %p155_p7 = pnand %p154_p6, %p148_p3 }
  0x10   :  { %158 = shalt.err (!%p155_p7)
}
  0x11   :  { %s210_s19 = smov 128   ;;  %s211_s20 = smov 8  }
  0x12   :  { %25 = dma.hbm_to_vmem [thread:$0]  %s267_s0, 256, %s20_s10, [#allocation3], %s210_s19, %s210_s19, %s211_s20  }
  0x13   :  { %s212_s23 = smov [#allocation5]   ;;  %s159_s27 = scalar_lea.hbm %s268_s1, 128 }
  0x14   :  { %s35_s24 = sshll.u32 %s212_s23, 4  ;;  %p160_p8 = scmp.ne.s32.totalorder %s268_s1, %s159_s27  ;;  %s36_s24 = int_to_ptr.vmem [resolvable:$true] %s35_s24 }
  0x15   :  { %p163_p9 = scmp.lt.u32.totalorder %s159_s27, %s268_s1 }
  0x17   :  { %p165_p10 = pnand %p163_p9, %p160_p8 }
  0x19   :  { %168 = shalt.err (!%p165_p10)
}
  0x1a   :  { %s169_s4 = scalar_lea.vmem %s36_s24, 128  ;;  %p174_p12 = scmp.lt.s32.totalorder %s36_s24, %s36_s24 }
  0x1b   :  { %p170_p11 = scmp.ne.s32.totalorder %s36_s24, %s169_s4  ;;  %p175_p13 = scmp.lt.s32.totalorder %s169_s4, %s169_s4 }
  0x1d   :  { %p176_p0 = por %p175_p13, %p174_p12 }
  0x1f   :  { %p177_p1 = pnand %p176_p0, %p170_p11 }
  0x21   :  { %180 = shalt.err (!%p177_p1)
}
  0x22   :  { %s213_s0 = smov 64   ;;  %s214_s5 = smov 4  }
  0x23   :  { %41 = dma.hbm_to_vmem [thread:$0]  %s268_s1, 128, %s36_s24, [#allocation6], %s213_s0, %s213_s0, %s214_s5  }
  0x24   :  { %203 = dma.done.wait [#allocation3], 256  }
  0x25   :  { %204 = vsyncadd [#allocation3], 4294967040 }
  0x26   :  { %205 = dma.done.wait [#allocation6], 128  }
  0x27   :  { %206 = vsyncadd [#allocation6], 4294967168  ;;  %v57_v0 = vld [vmem:[#allocation2] sm:$0xff]  ;;  %v58_v1 = vld [vmem:[#allocation2 + $0x8] sm:$0xff]  ;;  %s215_s1 = smov [#allocation7]  }
  0x28   :  { %v69_v2 = vand.u32 2147483647, %v57_v0  ;;  %v70_v3 = vand.u32 2147483647, %v58_v1  ;;  %v118_v11 = vld [vmem:[#allocation5] sm:$0xff]   ;;  %v63_v18 = vmax.f32 %v57_v0, 0.0 }
  0x29   :  { %v119_v14 = vunpack.c.l.bf16 %v118_v11  ;;  %v120_v16 = vunpack.c.h.bf16 %v118_v11  ;;  %v64_v22 = vmax.f32 %v58_v1, 0.0  ;;  %s107_s8 = sshll.u32 %s215_s1, 4  ;;  %s108_s8 = int_to_ptr.vmem [resolvable:$true] %s107_s8 }
  0x2a   :  { %v71_v4 = vsub.f32 0.0, %v69_v2  ;;  %v72_v5 = vsub.f32 0.0, %v70_v3  ;;  %s181_s9 = scalar_lea.vmem %s108_s8, 128  ;;  %p186_p3 = scmp.lt.s32.totalorder %s108_s8, %s108_s8 }
  0x2b   :  { %v65_v19 = vmul.f32 %v119_v14, %v57_v0  ;;  %v66_v23 = vmul.f32 %v120_v16, %v58_v1  ;;  %p182_p2 = scmp.ne.s32.totalorder %s108_s8, %s181_s9  ;;  %p187_p4 = scmp.lt.s32.totalorder %s181_s9, %s181_s9 }
  0x2c   :  { %v73_v6 = vmul.f32 1.442695, %v71_v4  ;;  %v75_v7 = vmul.f32 1.442695, %v72_v5 }
  0x2d   :  { %v67_v27 = vsub.f32 %v63_v18, %v65_v19  ;;  %v68_v30 = vsub.f32 %v64_v22, %v66_v23  ;;  %p188_p5 = por %p187_p4, %p186_p3 }
  0x2e   :  { %129 = vpow2.f32 %v73_v6 }
  0x2f   :  { %131 = vpow2.f32 %v75_v7  ;;  %p189_p6 = pnand %p188_p5, %p182_p2 }
  0x38   :  { %v130_v8 = vpop.eup %129 }
  0x39   :  { %v132_v9 = vpop.eup %131  ;;  %v77_v10 = vadd.f32 1.0, %v130_v8  ;;  %v80_v13 = vmul.f32 -0.5, %v130_v8  ;;  %v83_v20 = vand.u32 2147483647, %v130_v8 }
  0x3a   :  { %v86_v12 = vadd.f32 1.0, %v132_v9  ;;  %v89_v15 = vmul.f32 -0.5, %v132_v9  ;;  %v92_v24 = vand.u32 2147483647, %v132_v9 }
  0x3b   :  { %133 = vlog2.f32 %v77_v10  ;;  %v81_v17 = vadd.f32 1.0, %v80_v13  ;;  %vm84_vm0 = vcmp.lt.f32.partialorder %v83_v20, 0.0004427343 }
  0x3c   :  { %135 = vlog2.f32 %v86_v12  ;;  %v90_v21 = vadd.f32 1.0, %v89_v15  ;;  %vm93_vm1 = vcmp.lt.f32.partialorder %v92_v24, 0.0004427343 }
  0x3d   :  { %v82_v25 = vmul.f32 %v130_v8, %v81_v17 }
  0x3e   :  { %v91_v28 = vmul.f32 %v132_v9, %v90_v21 }
  0x45   :  { %v134_v26 = vpop.eup %133 }
  0x46   :  { %v136_v29 = vpop.eup %135  ;;  %v79_v31 = vmul.f32 0.6931472, %v134_v26 }
  0x47   :  { %v88_v32 = vmul.f32 0.6931472, %v136_v29 }
  0x48   :  { %v85_v33 = vsel %vm84_vm0, %v82_v25, %v79_v31 }
  0x49   :  { %v94_v34 = vsel %vm93_vm1, %v91_v28, %v88_v32  ;;  %v95_v35 = vadd.f32 %v85_v33, %v67_v27 }
  0x4a   :  { %v96_v36 = vadd.f32 %v94_v34, %v68_v30 }
  0x4c   :  { %v98_v37 = vadd.f32 %v96_v36, %v95_v35 }
  0x4e   :  { %100 = vst [vmem:[#allocation7] sm:$0xff] %v98_v37 }
  0x4f   :  { %192 = shalt.err (!%p189_p6)
}
  0x50   :  { %s193_s12 = scalar_lea.hbm %s269_s2, 128 }
  0x51   :  { %p194_p7 = scmp.ne.s32.totalorder %s269_s2, %s193_s12  ;;  %p197_p8 = scmp.lt.u32.totalorder %s193_s12, %s269_s2 }
  0x53   :  { %p199_p9 = pnand %p197_p8, %p194_p7 }
  0x55   :  { %202 = shalt.err (!%p199_p9)
}
  0x56   :  { %110 = dma.vmem_to_hbm [thread:$0]  %s108_s8, 128, %s269_s2, [#allocation4]  }
  0x57   :  { %207 = dma.done.wait [#allocation4], 128  }
  0x58   :  { %208 = vsyncadd [#allocation4], 4294967168 }
  0x59   :  { %114 = vsyncpa [#allocation3], 1 }
  0x5a   :  { %115 = vsyncpa [#allocation6], 1 }
  0x5b   :  { %116 = vsyncpa [#allocation4], 1 }

</bundles_post_ra>
